<compile_context>
chip_gen: v7x
topology: tpu7x:2x2x1
jax: 0.10.0
libtpu: 0.0.40
codegen_flags: <defaults>
</compile_context>

<pallas_src>
import functools

import jax
import jax.numpy as jnp
from jax.experimental import pallas as pl
from jax.experimental.pallas import tpu as pltpu

_TM = 128            # output-row tile
_TK = 256            # neighbour (reduction) tile
_NPAD = 256          # node padding multiple (lcm of _TM, _TK)
_LANE = 128          # lane padding for the tiny class dim
_NEG = -1e30         # "minus inf" for masked attention / padded logits
_VMEM_LIMIT = 32 * 1024 * 1024

_HEADS1, _DH1 = 4, 64
_HEADS2, _DH2 = 4, 32


# --------------------------------------------------------------------------- #
# Kernels
# --------------------------------------------------------------------------- #
def _linear_kernel(x_ref, w_ref, o_ref):
    # one row tile: (TM, F) @ (F, Dout) -> (TM, Dout), bf16 in, f32 accumulate
    o_ref[...] = jnp.dot(
        x_ref[...], w_ref[...], preferred_element_type=jnp.float32
    ).astype(o_ref.dtype)


def _gat_linear_kernel(x_ref, w_ref, attn_ref, xw_ref, score_ref):
    """Fused projection + per-node attention scores for one row tile.

    xw     = x @ W                       (TM, heads*dh)   bf16 out
    scores = xw @ A_blockdiag            (TM, 2*heads)    f32 out
             columns [0:H)  = <xw_h, a_src_h>, [H:2H) = <xw_h, a_dst_h>
    """
    xw = jnp.dot(x_ref[...], w_ref[...], preferred_element_type=jnp.float32)
    xw_bf = xw.astype(jnp.bfloat16)
    xw_ref[...] = xw_bf
    score_ref[...] = jnp.dot(xw_bf, attn_ref[...],
                             preferred_element_type=jnp.float32)


def _gat_attention_kernel(maskb_ref, kv_ref, asrc_ref, adst_ref, bias_ref,
                          o_ref, m_sc, l_sc, acc_sc, *, num_heads):
    """GAT aggregation for one (row-tile, neighbour-tile) grid step.

    Online-softmax (flash-attention style) over the neighbour axis, one pass per
    head (static unroll keeps every tile 2-D and vreg pressure low).  Attention
    logits use precomputed per-node scores; masking is an additive -1e30 bias
    (every node has a self loop, so each row has >= 1 finite logit and masked
    entries underflow to exactly 0 after exp).
    """
    k_step = pl.program_id(1)

    @pl.when(k_step == 0)
    def _init():
        m_sc[...] = jnp.full(m_sc.shape, _NEG, jnp.float32)
        l_sc[...] = jnp.zeros(l_sc.shape, jnp.float32)
        acc_sc[...] = jnp.zeros(acc_sc.shape, jnp.float32)

    neg_bias = maskb_ref[...].astype(jnp.float32)        # (TM, TK): 0 or -1e30

    for h in range(num_heads):                           # static unroll (heads = 4)
        kv = kv_ref[h]                                   # (TK, dh) bf16 source values

        # e[i, j] = leaky_relu(alpha_dst[i] + alpha_src[j]) + mask_bias[i, j]
        e = adst_ref[:, h:h + 1] + asrc_ref[h:h + 1, :]  # (TM,1)+(1,TK) -> (TM,TK)
        e = jnp.where(e > 0.0, e, 0.2 * e) + neg_bias    # LeakyReLU(0.2), mask

        # online softmax over the neighbour (lane) axis
        m_prev = m_sc[h]                                                  # (TM, 1)
        m_new = jnp.maximum(m_prev, jnp.max(e, axis=-1, keepdims=True))
        corr = jnp.exp(m_prev - m_new)
        p = jnp.exp(e - m_new)                                            # (TM, TK)
        l_sc[h] = corr * l_sc[h] + jnp.sum(p, axis=-1, keepdims=True)
        acc_sc[h] = corr * acc_sc[h] + jnp.dot(
            p, kv.astype(jnp.float32), preferred_element_type=jnp.float32)
        m_sc[h] = m_new

    @pl.when(k_step == pl.num_programs(1) - 1)
    def _finalize():
        # normalize, concat heads (lane-dense slab), GATConv bias, fused ReLU
        out = jnp.concatenate(
            [acc_sc[h] / l_sc[h] for h in range(num_heads)], axis=-1)
        out = out + bias_ref[...]
        o_ref[...] = jnp.maximum(out, 0.0).astype(o_ref.dtype)


def _gcn_logsoftmax_kernel(a_ref, xw_ref, b_ref, o_ref, acc_sc, *, num_classes):
    """GCN aggregation acc += A_hat_tile @ (h W3)_tile, then bias + log_softmax."""
    k_step = pl.program_id(1)

    @pl.when(k_step == 0)
    def _init():
        acc_sc[...] = jnp.zeros(acc_sc.shape, jnp.float32)

    acc_sc[...] += jnp.dot(a_ref[...], xw_ref[...],
                           preferred_element_type=jnp.float32)

    @pl.when(k_step == pl.num_programs(1) - 1)
    def _finalize():
        logits = acc_sc[...] + b_ref[...]                       # (TM, 128) lane-dense
        col = jax.lax.broadcasted_iota(jnp.int32, logits.shape, 1)
        logits = jnp.where(col < num_classes, logits, _NEG)     # mask padded classes
        m = jnp.max(logits, axis=-1, keepdims=True)
        z = logits - m
        lse = jnp.log(jnp.sum(jnp.exp(z), axis=-1, keepdims=True))
        o_ref[...] = (z - lse).astype(o_ref.dtype)


# --------------------------------------------------------------------------- #
# pallas_call wrappers
# --------------------------------------------------------------------------- #
def _compiler_params(dimension_semantics):
    return pltpu.CompilerParams(dimension_semantics=dimension_semantics,
                                vmem_limit_bytes=_VMEM_LIMIT)


def _linear(x_bf16, w_bf16):
    n, f = x_bf16.shape
    dout = w_bf16.shape[1]
    return pl.pallas_call(
        _linear_kernel,
        out_shape=jax.ShapeDtypeStruct((n, dout), jnp.bfloat16),
        grid_spec=pltpu.PrefetchScalarGridSpec(
            num_scalar_prefetch=0,
            grid=(n // _TM,),
            in_specs=[pl.BlockSpec((_TM, f), lambda i: (i, 0)),
                      pl.BlockSpec((f, dout), lambda i: (0, 0))],
            out_specs=pl.BlockSpec((_TM, dout), lambda i: (i, 0))),
        compiler_params=_compiler_params(("parallel",)),
    )(x_bf16, w_bf16)


def _gat_linear(x_bf16, w_bf16, attn_bf16):
    n, f = x_bf16.shape
    dout = w_bf16.shape[1]
    ncols = attn_bf16.shape[1]
    return pl.pallas_call(
        _gat_linear_kernel,
        out_shape=(jax.ShapeDtypeStruct((n, dout), jnp.bfloat16),
                   jax.ShapeDtypeStruct((n, ncols), jnp.float32)),
        grid_spec=pltpu.PrefetchScalarGridSpec(
            num_scalar_prefetch=0,
            grid=(n // _TM,),
            in_specs=[pl.BlockSpec((_TM, f), lambda i: (i, 0)),
                      pl.BlockSpec((f, dout), lambda i: (0, 0)),
                      pl.BlockSpec((dout, ncols), lambda i: (0, 0))],
            out_specs=[pl.BlockSpec((_TM, dout), lambda i: (i, 0)),
                       pl.BlockSpec((_TM, ncols), lambda i: (i, 0))]),
        compiler_params=_compiler_params(("parallel",)),
    )(x_bf16, w_bf16, attn_bf16)


def _gat_aggregate(maskb_bf, kv_heads, alpha_src_t, alpha_dst, bias_row):
    heads, npad, dh = kv_heads.shape
    kernel = functools.partial(_gat_attention_kernel, num_heads=heads)
    return pl.pallas_call(
        kernel,
        out_shape=jax.ShapeDtypeStruct((npad, heads * dh), jnp.bfloat16),
        grid_spec=pltpu.PrefetchScalarGridSpec(
            num_scalar_prefetch=0,
            grid=(npad // _TM, npad // _TK),
            in_specs=[
                pl.BlockSpec((_TM, _TK), lambda i, k: (i, k)),           # additive mask
                pl.BlockSpec((heads, _TK, dh), lambda i, k: (0, k, 0)),  # source values
                pl.BlockSpec((heads, _TK), lambda i, k: (0, k)),         # alpha_src (lanes)
                pl.BlockSpec((_TM, heads), lambda i, k: (i, 0)),         # alpha_dst (sublanes)
                pl.BlockSpec((1, heads * dh), lambda i, k: (0, 0)),      # bias
            ],
            out_specs=pl.BlockSpec((_TM, heads * dh), lambda i, k: (i, 0)),
            scratch_shapes=[
                pltpu.VMEM((heads, _TM, 1), jnp.float32),   # running max
                pltpu.VMEM((heads, _TM, 1), jnp.float32),   # running denominator
                pltpu.VMEM((heads, _TM, dh), jnp.float32),  # running numerator
            ]),
        compiler_params=_compiler_params(("parallel", "arbitrary")),
    )(maskb_bf, kv_heads, alpha_src_t, alpha_dst, bias_row)


def _gcn_logsoftmax(a_hat_bf, xw_bf, bias_pad, num_classes):
    npad = a_hat_bf.shape[0]
    cp = xw_bf.shape[1]
    kernel = functools.partial(_gcn_logsoftmax_kernel, num_classes=num_classes)
    return pl.pallas_call(
        kernel,
        out_shape=jax.ShapeDtypeStruct((npad, cp), jnp.float32),
        grid_spec=pltpu.PrefetchScalarGridSpec(
            num_scalar_prefetch=0,
            grid=(npad // _TM, npad // _TK),
            in_specs=[pl.BlockSpec((_TM, _TK), lambda i, k: (i, k)),
                      pl.BlockSpec((_TK, cp), lambda i, k: (k, 0)),
                      pl.BlockSpec((1, cp), lambda i, k: (0, 0))],
            out_specs=pl.BlockSpec((_TM, cp), lambda i, k: (i, 0)),
            scratch_shapes=[pltpu.VMEM((_TM, cp), jnp.float32)]),
        compiler_params=_compiler_params(("parallel", "arbitrary")),
    )(a_hat_bf, xw_bf, bias_pad)


# --------------------------------------------------------------------------- #
# Graph preprocessing (plain JAX glue, done once per graph) + forward
# --------------------------------------------------------------------------- #
def _round_up(n, m):
    return ((n + m - 1) // m) * m


def _attn_block_matrix(asrc, adst):
    """(heads*dh, 2*heads) block matrix: col h = a_src[h], col heads+h = a_dst[h]."""
    heads, dh = asrc.shape
    m = jnp.zeros((heads * dh, 2 * heads), jnp.float32)
    for h in range(heads):
        m = m.at[h * dh:(h + 1) * dh, h].set(asrc[h])
        m = m.at[h * dh:(h + 1) * dh, heads + h].set(adst[h])
    return m


def build_graph_mats(edge_index, num_nodes, padded_nodes):
    """Edge bool, additive attention mask (bf16) and GCN-normalized adjacency (bf16).

    edge_index: (2, E), row 0 = source j, row 1 = target i; adj[i, j] = 1.
    Duplicate edges collapse (simple graph), matching add_self_loops=True defaults
    of GATConv / GCNConv.  Padded rows only get a self loop (never touch real rows).
    """
    del num_nodes
    src, dst = edge_index[0], edge_index[1]
    adj = jnp.zeros((padded_nodes, padded_nodes), jnp.float32).at[dst, src].set(1.0)
    adj = jnp.maximum(adj, jnp.eye(padded_nodes, dtype=jnp.float32))   # self loops
    edge = adj > 0.5
    maskb = jnp.where(edge, 0.0, _NEG).astype(jnp.bfloat16)            # additive mask
    deg = jnp.sum(adj, axis=1)
    dinv = jax.lax.rsqrt(deg)                                          # deg >= 1
    a_hat = (dinv[:, None] * adj * dinv[None, :]).astype(jnp.bfloat16)
    return edge, maskb, a_hat


def gat_forward(x, edge_index, params):
    (w1, as1, ad1, b1), (w2, as2, ad2, b2), (w3, b3) = params
    n, f = x.shape
    c = w3.shape[1]
    npad = _round_up(n, _NPAD)

    _, maskb_bf, a_hat_bf = build_graph_mats(edge_index, n, npad)
    h = jnp.zeros((npad, f), jnp.float32).at[:n].set(x).astype(jnp.bfloat16)

    # --- two GATConv layers (projection+scores, attention aggregation, bias, ReLU)
    for w, asrc, adst, b in ((w1, as1, ad1, b1), (w2, as2, ad2, b2)):
        heads, dh = asrc.shape
        attn = _attn_block_matrix(asrc, adst).astype(jnp.bfloat16)       # (H*dh, 2H)
        xw, scores = _gat_linear(h, w.astype(jnp.bfloat16), attn)        # (Np,H*dh), (Np,2H)
        kv_heads = xw.reshape(npad, heads, dh).transpose(1, 0, 2)        # (H, Np, dh)
        alpha_src_t = scores[:, :heads].T                                # (H, Np) -> lanes
        alpha_dst = scores[:, heads:]                                    # (Np, H) -> sublanes
        h = _gat_aggregate(maskb_bf, kv_heads, alpha_src_t, alpha_dst,
                           b.reshape(1, heads * dh))                     # (Np, H*dh) bf16

    # --- final GCNConv + log_softmax; class dim padded to a lane-dense slab ---
    w3_pad = jnp.zeros((w3.shape[0], _LANE), jnp.float32).at[:, :c].set(w3)
    b3_pad = jnp.zeros((1, _LANE), jnp.float32).at[0, :c].set(b3)
    xw3 = _linear(h, w3_pad.astype(jnp.bfloat16))                        # (Np, 128)
    out = _gcn_logsoftmax(a_hat_bf, xw3, b3_pad, c)                      # (Np, 128) f32
    return out[:n, :c]


# --------------------------------------------------------------------------- #
# Pure-JAX reference (mirrors the kernel's bf16 quantization points exactly)
# --------------------------------------------------------------------------- #
def _q(a):
    return a.astype(jnp.bfloat16).astype(jnp.float32)


def reference_forward(x, edge_index, params):
    hi = jax.lax.Precision.HIGHEST
    (w1, as1, ad1, b1), (w2, as2, ad2, b2), (w3, b3) = params
    n = x.shape[0]
    npad = _round_up(n, _NPAD)
    edge, _, a_hat_bf = build_graph_mats(edge_index, n, npad)
    a_hat = a_hat_bf.astype(jnp.float32)
    h = _q(jnp.zeros((npad, x.shape[1]), jnp.float32).at[:n].set(x))

    for w, asrc, adst, b in ((w1, as1, ad1, b1), (w2, as2, ad2, b2)):
        heads, dh = asrc.shape
        xw = _q(jnp.dot(h, _q(w), precision=hi))                         # (Np, H*dh)
        scores = jnp.dot(xw, _q(_attn_block_matrix(asrc, adst)), precision=hi)
        a_src, a_dst = scores[:, :heads], scores[:, heads:]              # (Np, H)
        xw_h = xw.reshape(npad, heads, dh).transpose(1, 0, 2)            # (H, Np, dh)
        e = a_dst.T[:, :, None] + a_src.T[:, None, :]                    # (H, Np, Np)
        e = jnp.where(e > 0.0, e, 0.2 * e)
        e = jnp.where(edge[None], e, _NEG)
        e = e - jnp.max(e, axis=-1, keepdims=True)
        p = jnp.where(edge[None], jnp.exp(e), 0.0)
        p = p / jnp.sum(p, axis=-1, keepdims=True)
        out = jnp.einsum('hij,hjd->hid', p, xw_h, precision=hi)
        out = out.transpose(1, 0, 2).reshape(npad, heads * dh) + b[None, :]
        h = _q(jnp.maximum(out, 0.0))

    xw3 = _q(jnp.dot(h, _q(w3), precision=hi))
    logits = jnp.dot(a_hat, xw3, precision=hi) + b3
    return jax.nn.log_softmax(logits, axis=-1)[:n]


# --------------------------------------------------------------------------- #
# Params / demo
# --------------------------------------------------------------------------- #
def init_params(key, num_features, num_classes):
    def glorot(k, shape):
        fan_in, fan_out = shape[-2], shape[-1]
        s = (6.0 / (fan_in + fan_out)) ** 0.5
        return jax.random.uniform(k, shape, jnp.float32, -s, s)

    ks = jax.random.split(key, 7)
    w1 = glorot(ks[0], (num_features, _HEADS1 * _DH1))
    as1 = glorot(ks[1], (_HEADS1, _DH1))
    ad1 = glorot(ks[2], (_HEADS1, _DH1))
    b1 = jnp.zeros((_HEADS1 * _DH1,), jnp.float32)
    w2 = glorot(ks[3], (_HEADS1 * _DH1, _HEADS2 * _DH2))
    as2 = glorot(ks[4], (_HEADS2, _DH2))
    ad2 = glorot(ks[5], (_HEADS2, _DH2))
    b2 = jnp.zeros((_HEADS2 * _DH2,), jnp.float32)
    w3 = glorot(ks[6], (_HEADS2 * _DH2, num_classes))
    b3 = jnp.zeros((num_classes,), jnp.float32)
    return (w1, as1, ad1, b1), (w2, as2, ad2, b2), (w3, b3)


if __name__ == "__main__":
    key = jax.random.PRNGKey(0)
    k_x, k_e, k_p = jax.random.split(key, 3)

    num_nodes = 256
    num_features = 16
    num_classes = 8
    num_edges = 512

    x = jax.random.normal(k_x, (num_nodes, num_features), jnp.float32)
    src = jax.random.randint(k_e, (num_edges,), 0, num_nodes)
    dst = jax.random.randint(jax.random.fold_in(k_e, 1), (num_edges,), 0, num_nodes)
    edge_index = jnp.stack(
        [jnp.concatenate([src, dst]), jnp.concatenate([dst, src])], axis=0
    ).astype(jnp.int32)

    params = init_params(k_p, num_features, num_classes)

    out = jax.block_until_ready(gat_forward(x, edge_index, params))
    ref = jax.block_until_ready(reference_forward(x, edge_index, params))

    assert out.shape == (num_nodes, num_classes)
    assert bool(jnp.all(jnp.isfinite(out)))
    # log_softmax rows must sum to 1 in probability space
    assert jnp.allclose(jnp.sum(jnp.exp(out), axis=1), 1.0, atol=1e-3)
    # bf16-streamed operands are mirrored in the reference; remaining difference
    # is f32 accumulation-order noise.
    assert jnp.allclose(out, ref, atol=1e-2, rtol=1e-2), float(
        jnp.max(jnp.abs(out - ref)))

    print("KERNEL_OK")
</pallas_src>

<mosaic_0001>
module attributes {stable_mosaic.version = 11 : i64} {
  func.func @_gat_linear_kernel(%arg0: i32, %arg1: memref<128x16xbf16, #tpu.memory_space<vmem>>, %arg2: memref<16x256xbf16, #tpu.memory_space<vmem>>, %arg3: memref<256x8xbf16, #tpu.memory_space<vmem>>, %arg4: memref<128x256xbf16, #tpu.memory_space<vmem>>, %arg5: memref<128x8xf32, #tpu.memory_space<vmem>>) attributes {dimension_semantics = [#tpu.dimension_semantics<parallel>], iteration_bounds = array<i64: 2>, scalar_prefetch = 0 : i64, scratch_operands = 0 : i64, tpu.core_type = #tpu.core_type<tc>, window_params = [{transform_indices = @transform_0, window_bounds = array<i64: 128, 16>}, {pipeline_mode = #tpu.pipeline_mode<synchronous>, transform_indices = @transform_1, window_bounds = array<i64: 16, 256>}, {pipeline_mode = #tpu.pipeline_mode<synchronous>, transform_indices = @transform_2, window_bounds = array<i64: 256, 8>}, {transform_indices = @transform_3, window_bounds = array<i64: 128, 256>}, {transform_indices = @transform_4, window_bounds = array<i64: 128, 8>}]} {
    %c0 = arith.constant 0 : index
    %c0_0 = arith.constant 0 : index
    %0 = vector.load %arg1[%c0, %c0_0] : memref<128x16xbf16, #tpu.memory_space<vmem>>, vector<128x16xbf16>
    %c0_1 = arith.constant 0 : index
    %c0_2 = arith.constant 0 : index
    %1 = vector.load %arg2[%c0_1, %c0_2] : memref<16x256xbf16, #tpu.memory_space<vmem>>, vector<16x256xbf16>
    %cst = arith.constant dense<0.000000e+00> : vector<128x256xf32>
    %2 = tpu.matmul %0, %1, %cst {dimension_numbers = #tpu.dot_dimension_numbers<[1], [0], [0], [1], [0, 0, 1, 1], [], []>} : vector<128x16xbf16>, vector<16x256xbf16>, vector<128x256xf32> -> vector<128x256xf32>
    %3 = arith.truncf %2 : vector<128x256xf32> to vector<128x256xbf16>
    %c0_3 = arith.constant 0 : index
    %c0_4 = arith.constant 0 : index
    %4 = vector.load %arg4[%c0_3, %c0_4] : memref<128x256xbf16, #tpu.memory_space<vmem>>, vector<128x256xbf16>
    tpu.vector_store %arg4[%c0_3, %c0_4], %3 {strides = array<i32>} : memref<128x256xbf16, #tpu.memory_space<vmem>>, vector<128x256xbf16>,
    %c0_5 = arith.constant 0 : index
    %c0_6 = arith.constant 0 : index
    %5 = vector.load %arg3[%c0_5, %c0_6] : memref<256x8xbf16, #tpu.memory_space<vmem>>, vector<256x8xbf16>
    %cst_7 = arith.constant dense<0.000000e+00> : vector<128x8xf32>
    %6 = tpu.matmul %3, %5, %cst_7 {dimension_numbers = #tpu.dot_dimension_numbers<[1], [0], [0], [1], [0, 0, 1, 1], [], []>} : vector<128x256xbf16>, vector<256x8xbf16>, vector<128x8xf32> -> vector<128x8xf32>
    %c0_8 = arith.constant 0 : index
    %c0_9 = arith.constant 0 : index
    %7 = vector.load %arg5[%c0_8, %c0_9] : memref<128x8xf32, #tpu.memory_space<vmem>>, vector<128x8xf32>
    tpu.vector_store %arg5[%c0_8, %c0_9], %6 {strides = array<i32>} : memref<128x8xf32, #tpu.memory_space<vmem>>, vector<128x8xf32>,
    return
  }
  func.func @transform_0(%arg0: i32) -> (i32, i32) {
    %c0_i32 = arith.constant 0 : i32
    %c0_i32_0 = arith.constant 0 : i32
    return %arg0, %c0_i32 : i32, i32
  }
  func.func @transform_1(%arg0: i32) -> (i32, i32) {
    %c0_i32 = arith.constant 0 : i32
    %c0_i32_0 = arith.constant 0 : i32
    %c0_i32_1 = arith.constant 0 : i32
    return %c0_i32, %c0_i32_0 : i32, i32
  }
  func.func @transform_2(%arg0: i32) -> (i32, i32) {
    %c0_i32 = arith.constant 0 : i32
    %c0_i32_0 = arith.constant 0 : i32
    %c0_i32_1 = arith.constant 0 : i32
    return %c0_i32, %c0_i32_0 : i32, i32
  }
  func.func @transform_3(%arg0: i32) -> (i32, i32) {
    %c0_i32 = arith.constant 0 : i32
    %c0_i32_0 = arith.constant 0 : i32
    return %arg0, %c0_i32 : i32, i32
  }
  func.func @transform_4(%arg0: i32) -> (i32, i32) {
    %c0_i32 = arith.constant 0 : i32
    %c0_i32_0 = arith.constant 0 : i32
    return %arg0, %c0_i32 : i32, i32
  }
}

</mosaic_0001>

<bundles_post_ra>
// kernel: tpu_custom_call.1
= control target key start
LH: loop header
LB: loop body
LE: loop exit
PB: predicated region body
PF: predicated region fallthrough
CT: control target
= control target key end

     0   :  { %10 = vsyncpa [#allocation3], 0  ;;  %s1456_s0 = inlined_call_operand.vmem [shape: bf16[256,16], index: 0, kind: input, shape index: {}]   ;;  %s1457_s1 = inlined_call_operand.vmem [shape: bf16[16,256], index: 1, kind: input, shape index: {}]   ;;  %s1458_s2 = inlined_call_operand.vmem [shape: bf16[256,8], index: 2, kind: input, shape index: {}]   ;;  %s1459_s3 = inlined_call_operand.hbm [shape: bf16[256,256], index: 3, kind: output, shape index: {0}]   ;;  %s1460_s4 = inlined_call_operand.vmem [shape: f32[256,8], index: 4, kind: output, shape index: {1}]  }
   0x1   :  { %12 = vsyncpa [#allocation3 + $0x1], 0  ;;  %s1210_s15 = smov 0   ;;  %s1212_s16 = smov 0  }
   0x2   :  { %s1214_s17 = smov 0   ;;  %s1216_s18 = smov 0  }
   0x3 LB: > { %s1231_s19 = sadd.s32 4294967295, %s1179_s18   ;;  %s885_s20 = sadd.s32 4294967294, %s1179_s18   ;;  %s1179_s18 = sphi %s1216_s18, %s1466_s18   ;;  %s1175_s17 = sphi %s1214_s17, %s1465_s17   ;;  %s1171_s16 = sphi %s1212_s16, %s1464_s16   ;;  %s1167_s15 = sphi %s1210_s15, %s1463_s15  }
   0x4   : > { %s1235_s21 = sadd.s32 1, %s1179_s18   ;;  %s93_s22 = sadd.s32 1, %s1175_s17 }
   0x5   : > { %s90_s23 = ssub.s32 %s1179_s18, %s1235_s21  ;;  %p103_p0 = scmp.ne.s32.totalorder %s1175_s17, %s1171_s16 }
   0x6   : > { %p91_p1 = scmp.eq.s32.totalorder %s90_s23, 0  ;;  %p104_p2 = scmp.eq.s32.totalorder %s1231_s19, 1 }
   0x7   : > { %p109_p3 = scmp.ne.s32.totalorder %s1171_s16, %s1167_s15  ;;  %p110_p4 = scmp.eq.s32.totalorder %s885_s20, 1 }
   0x8   : > { %s1246_s24 = scalar_select %p91_p1, %s1175_s17, %s93_s22  }
   0x9   : > { %p1248_p5 = por %p104_p2, %p103_p0  ;;  %p1252_p6 = por %p110_p4, %p109_p3 }
   0xa   : > { %p888_p7 = scmp.ge.s32.totalorder %s1179_s18, 1  ;;  %p169_p8 = scmp.lt.s32.totalorder %s1179_s18, 3 }
   0xc   : > { %p170_p9 = pnand %p888_p7, %p169_p8 }
   0xd   : > { %v1090_v0 = vld [vmem:[%s1457_s1 + $0x4] ss:$8 sps:$4 sm:$0xff] (!%p170_p9)   ;;  %s890_s29 = sshll.u32 (!%p170_p9), %s1231_s19, 4  ;;  %v1092_v1 = vld [vmem:[%s1457_s1] ss:$8 sps:$4 sm:$0xff] (!%p170_p9)   ;;  %v1181_v2 = vmov (!%p170_p9), 0  }
   0xe   : > { %173 = sbr.rel (%p170_p9) target bundleno = 517 (0x205), region = 32  ;;  %339 = vmatprep.mubr.bf16.mxu0 (!%p170_p9), %v1181_v2  ;;  %p201_p10 = scmp.lt.s32.totalorder (!%p170_p9), %s890_s29, 31  ;;  %307 = vmatprep.subr.bf16.mxu0 (!%p170_p9), %v1090_v0  ;;  %v1101_v3 = vld [vmem:[%s1458_s2 + $0x40] sm:$0xff] (!%p170_p9)   ;;  %v1103_v5 = vld [vmem:[%s1458_s2 + $0x48] sm:$0xff] (!%p170_p9)   ;;  %vm282_vm0 = vcmask (!%p170_p9), 130048   ;;  %v1105_v8 = vld [vmem:[%s1458_s2 + $0x50] sm:$0xff] (!%p170_p9)  }
   0xf   : > { %308 = vmatpush1.bf16.msra.mxu0 (!%p170_p9), %v1092_v1  ;;  %v1102_v4 = vld [vmem:[%s1458_s2] sm:$0xff] (!%p170_p9)   ;;  %1032 = vmatprep.subr.bf16.mxu1 (!%p170_p9), %v1101_v3  ;;  %v1104_v6 = vld [vmem:[%s1458_s2 + $0x8] sm:$0xff] (!%p170_p9)   ;;  %v1106_v10 = vld [vmem:[%s1458_s2 + $0x10] sm:$0xff] (!%p170_p9)   ;;  %s967_s13 = sshll.u32 (!%p170_p9), %s1231_s19, 11  ;;  %s1182_s19 = smov (!%p170_p9), [#allocation2]  }
  0x10   : > { %968 = vmatprep.subr.bf16.mxu0 (!%p170_p9), %v1101_v3  ;;  %1040 = vmatpush3.bf16.msra.mxu1 (!%p170_p9), %v1102_v4  ;;  %v1107_v11 = vld [vmem:[%s1458_s2 + $0x58] sm:$0xff] (!%p170_p9)   ;;  %v1109_v13 = vld [vmem:[%s1458_s2 + $0x60] sm:$0xff] (!%p170_p9)   ;;  %v1111_v16 = vld [vmem:[%s1458_s2 + $0x68] sm:$0xff] (!%p170_p9)   ;;  %s1371_s27 = scalar_lea.hbm (!%p170_p9), %s1459_s3, %s967_s13  ;;  %s1121_s5 = sshll.u32 (!%p170_p9), %s1182_s19, 4  ;;  %s1122_s5 = int_to_ptr.vmem [resolvable:$false] %s1121_s5 }
  0x11   : > { %1033 = vmatprep.subr.bf16.mxu1 (!%p170_p9), %v1103_v5  ;;  %v1108_v12 = vld [vmem:[%s1458_s2 + $0x18] sm:$0xff] (!%p170_p9)   ;;  %v1110_v15 = vld [vmem:[%s1458_s2 + $0x20] sm:$0xff] (!%p170_p9)   ;;  %v1112_v17 = vld [vmem:[%s1458_s2 + $0x28] sm:$0xff] (!%p170_p9)   ;;  %s1123_s6 = scalar_lea.vmem (!%p170_p9), %s1122_s5, 4096 }
  0x12   : > { %v1113_v18 = vld [vmem:[%s1458_s2 + $0x70] sm:$0xff] (!%p170_p9)   ;;  %v1115_v25 = vld [vmem:[%s1458_s2 + $0x78] sm:$0xff] (!%p170_p9)  }
  0x13   : > { %v1114_v24 = vld [vmem:[%s1458_s2 + $0x30] sm:$0xff] (!%p170_p9)   ;;  %v1116_v26 = vld [vmem:[%s1458_s2 + $0x38] sm:$0xff] (!%p170_p9)  }
  0x14   : > { %1041 = vmatpush3.bf16.msra.mxu1 (!%p170_p9), %v1104_v6 }
  0x15   : > { %s1468_s29 = smov (!%p201_p10, %s890_s29), 31  ;;  %1034 = vmatprep.subr.bf16.mxu1 %v1105_v8 }
  0x16   : > { %s891_s12 = sshll.u32 %s1468_s29, 2 }
  0x17   : > { %s1281_s20 = scalar_lea.vmem %s1456_s0, %s891_s12 }
  0x18   : > { %v1093_v7 = vld [vmem:[%s1281_s20] sm:$0xff]   ;;  %v1094_v9 = vld [vmem:[%s1281_s20 + $0x8] sm:$0xff]   ;;  %1042 = vmatpush3.bf16.msra.mxu1 %v1106_v10  ;;  %v1095_v14 = vld [vmem:[%s1281_s20 + $0x10] sm:$0xff]  }
  0x19   : > { %904 = vmatmul.mubr.msk.bf16.vlgmr.msra.gmra.mrb[0].mxu0 %vm282_vm0, %v1093_v7  ;;  %1035 = vmatprep.subr.bf16.mxu1 %v1107_v11  ;;  %v1096_v19 = vld [vmem:[%s1281_s20 + $0x18] sm:$0xff]   ;;  %v1097_v20 = vld [vmem:[%s1281_s20 + $0x20] sm:$0xff]   ;;  %v1098_v21 = vld [vmem:[%s1281_s20 + $0x28] sm:$0xff]  }
  0x1a   : > { %349 = vmatprep.mubr.bf16.mxu0 %v1181_v2  ;;  %969 = vmatpush3.bf16.msra.mxu0 %v1102_v4  ;;  %v1099_v22 = vld [vmem:[%s1281_s20 + $0x30] sm:$0xff]   ;;  %v1100_v23 = vld [vmem:[%s1281_s20 + $0x38] sm:$0xff]   ;;  %s190_s20 = sand.u32 1, %s1171_s16  }
  0x1b   : > { %970 = vmatprep.subr.bf16.mxu0 %v1103_v5  ;;  %s889_s11 = sshll.u32 %s190_s20, 7  ;;  %s1377_s28 = scalar_lea.sflag [#allocation3], %s190_s20 }
  0x1c   : > { %1043 = vmatpush3.bf16.msra.mxu1 %v1108_v12  ;;  %s1348_s12 = scalar_lea.vmem [#allocation2], %s889_s11 }
  0x1d   : > { %1036 = vmatprep.subr.bf16.mxu1 %v1109_v13  ;;  %s794_s14 = sshll.u32 %s1348_s12, 4  ;;  %s1373_s14 = int_to_ptr.vmem [resolvable:$true] %s794_s14 }
  0x1e   : > { %971 = vmatpush3.bf16.msra.mxu0 %v1104_v6  ;;  %s1117_s30 = scalar_lea.vmem %s1373_s14, 2048  ;;  %p1124_p0 = scmp.lt.s32.totalorder %s1373_s14, %s1122_s5 }
  0x1f   : > { %972 = vmatprep.subr.bf16.mxu0 %v1105_v8  ;;  %p1118_p11 = scmp.ne.s32.totalorder %s1373_s14, %s1117_s30  ;;  %p1125_p1 = scmp.lt.s32.totalorder %s1123_s6, %s1117_s30 }
  0x20   : > { %1044 = vmatpush3.bf16.msra.mxu1 %v1110_v15 }
  0x21   : > { %905 = vmatmul.mubr.msk.bf16.gmra.mrb[4].mxu0 %vm282_vm0, %v1094_v9  ;;  %1037 = vmatprep.subr.bf16.mxu1 %v1111_v16  ;;  %p1119_p12 = pnand %p1118_p11, %p1248_p5  ;;  %p1126_p2 = por %p1125_p1, %p1124_p0 }
  0x22   : > { %359 = vmatprep.mubr.bf16.mxu0 %v1181_v2  ;;  %973 = vmatpush3.bf16.msra.mxu0 %v1106_v10 }
  0x23   : > { %974 = vmatprep.subr.bf16.mxu0 %v1107_v11  ;;  %p1120_p13 = pneg %p1119_p12 }
  0x24   : > { %1045 = vmatpush3.bf16.msra.mxu1 %v1112_v17 }
  0x25   : > { %1038 = vmatprep.subr.bf16.mxu1 %v1113_v18  ;;  %p1127_p3 = pnand %p1126_p2, %p1120_p13 }
  0x26   : > { %975 = vmatpush3.bf16.msra.mxu0 %v1108_v12 }
  0x27   : > { %976 = vmatprep.subr.bf16.mxu0 %v1109_v13 }
  0x28   : > { %1046 = vmatpush3.bf16.msra.mxu1 %v1114_v24 }
  0x29   : > { %906 = vmatmul.mubr.msk.bf16.gmra.mrb[8].mxu0 %vm282_vm0, %v1095_v14  ;;  %1039 = vmatprep.subr.bf16.mxu1 %v1115_v25 }
  0x2a   : > { %369 = vmatprep.mubr.bf16.mxu0 %v1181_v2  ;;  %977 = vmatpush3.bf16.msra.mxu0 %v1110_v15 }
  0x2b   : > { %978 = vmatprep.subr.bf16.mxu0 %v1111_v16 }
  0x2c   : > { %1047 = vmatpush3.bf16.msra.mxu1 %v1116_v26 }
  0x2e   : > { %979 = vmatpush3.bf16.msra.mxu0 %v1112_v17 }
  0x2f   : > { %980 = vmatprep.subr.bf16.mxu0 %v1113_v18 }
  0x31   : > { %907 = vmatmul.mubr.msk.bf16.gmra.mrb[12].mxu0 %vm282_vm0, %v1096_v19 }
  0x32   : > { %379 = vmatprep.mubr.bf16.mxu0 %v1181_v2  ;;  %981 = vmatpush3.bf16.msra.mxu0 %v1114_v24 }
  0x33   : > { %982 = vmatprep.subr.bf16.mxu0 %v1115_v25 }
  0x36   : > { %983 = vmatpush3.bf16.msra.mxu0 %v1116_v26 }
  0x39   : > { %908 = vmatmul.mubr.msk.bf16.gmra.mrb[16].mxu0 %vm282_vm0, %v1097_v20 }
  0x3a   : > { %389 = vmatprep.mubr.bf16.mxu0 %v1181_v2 }
  0x41   : > { %909 = vmatmul.mubr.msk.bf16.gmra.mrb[20].mxu0 %vm282_vm0, %v1098_v21 }
  0x42   : > { %399 = vmatprep.mubr.bf16.mxu0 %v1181_v2 }
  0x49   : > { %910 = vmatmul.mubr.msk.bf16.gmra.mrb[24].mxu0 %vm282_vm0, %v1099_v22 }
  0x4a   : > { %409 = vmatprep.mubr.bf16.mxu0 %v1181_v2 }
  0x51   : > { %911 = vmatmul.mubr.msk.bf16.gmra.mrb[28].mxu0 %vm282_vm0, %v1100_v23 }
  0xec   : > { %v341_v27 = vpop.f32.mrb[0].mxu0 }
  0xed   : > { %v343_v28 = vpop.f32.mrb[1].mxu0 }
  0xee   : > { %v950_v29 = vpack.c.bf16 %v343_v28, %v341_v27  ;;  %v345_v30 = vpop.f32.mrb[2].mxu0 }
  0xef   : > { %v420_v31 = vpack.c.bf16 %v345_v30, %v341_v27  ;;  %v347_v32 = vpop.f32.mrb[3].mxu0 }
  0xf0   : > { %516 = vst [vmem:[%s1348_s12] sm:$0xff] %v950_v29  ;;  %v421_v33 = vpack.c.bf16 %v347_v32, %v343_v28  ;;  %v951_v34 = vpack.c.bf16 %v347_v32, %v345_v30 }
  0xf2   : > { %517 = vst [vmem:[%s1348_s12 + $0x8] sm:$0xff] %v951_v34  ;;  %692 = vmatprep.mubr.bf16.mxu0 %v421_v33 }
  0xf3   : > { %693 = vmatmul.mubr.bf16.vlgmr.msra.gmra.mrb[32].mxu0 %v420_v31 }
  0xf4   : > { %v351_v35 = vpop.f32.mrb[4].mxu0 }
  0xf5   : > { %v353_v36 = vpop.f32.mrb[5].mxu0 }
  0xf6   : > { %v952_v37 = vpack.c.bf16 %v353_v36, %v351_v35  ;;  %v355_v38 = vpop.f32.mrb[6].mxu0 }
  0xf7   : > { %v422_v39 = vpack.c.bf16 %v355_v38, %v351_v35  ;;  %v357_v40 = vpop.f32.mrb[7].mxu0 }
  0xf8   : > { %518 = vst [vmem:[%s1348_s12 + $0x10] sm:$0xff] %v952_v37  ;;  %v953_v41 = vpack.c.bf16 %v357_v40, %v355_v38  ;;  %v423_v42 = vpack.c.bf16 %v357_v40, %v353_v36 }
  0xfa   : > { %519 = vst [vmem:[%s1348_s12 + $0x18] sm:$0xff] %v953_v41  ;;  %700 = vmatprep.mubr.bf16.mxu1 %v423_v42 }
  0xfb   : > { %701 = vmatmul.mubr.bf16.vlgmr.msra.gmra.mrb[0].mxu1 %v422_v39 }
  0xfc   : > { %v361_v43 = vpop.f32.mrb[8].mxu0 }
  0xfd   : > { %v363_v44 = vpop.f32.mrb[9].mxu0 }
  0xfe   : > { %v954_v45 = vpack.c.bf16 %v363_v44, %v361_v43  ;;  %v365_v46 = vpop.f32.mrb[10].mxu0 }
  0xff   : > { %v424_v47 = vpack.c.bf16 %v365_v46, %v361_v43  ;;  %v367_v48 = vpop.f32.mrb[11].mxu0 }
 0x100   : > { %520 = vst [vmem:[%s1348_s12 + $0x20] sm:$0xff] %v954_v45  ;;  %v425_v49 = vpack.c.bf16 %v367_v48, %v363_v44  ;;  %v955_v50 = vpack.c.bf16 %v367_v48, %v365_v46 }
 0x102   : > { %521 = vst [vmem:[%s1348_s12 + $0x28] sm:$0xff] %v955_v50  ;;  %708 = vmatprep.mubr.bf16.mxu1 %v425_v49 }
 0x103   : > { %709 = vmatmul.mubr.bf16.gmra.mrb[4].mxu1 %v424_v47 }
 0x104   : > { %v371_v51 = vpop.f32.mrb[12].mxu0 }
 0x105   : > { %v373_v52 = vpop.f32.mrb[13].mxu0 }
 0x106   : > { %v956_v53 = vpack.c.bf16 %v373_v52, %v371_v51  ;;  %v375_v54 = vpop.f32.mrb[14].mxu0 }
 0x107   : > { %v426_v55 = vpack.c.bf16 %v375_v54, %v371_v51  ;;  %v377_v56 = vpop.f32.mrb[15].mxu0 }
 0x108   : > { %522 = vst [vmem:[%s1348_s12 + $0x30] sm:$0xff] %v956_v53  ;;  %v427_v57 = vpack.c.bf16 %v377_v56, %v373_v52  ;;  %v957_v58 = vpack.c.bf16 %v377_v56, %v375_v54 }
 0x10a   : > { %523 = vst [vmem:[%s1348_s12 + $0x38] sm:$0xff] %v957_v58  ;;  %716 = vmatprep.mubr.bf16.mxu1 %v427_v57 }
 0x10b   : > { %717 = vmatmul.mubr.bf16.gmra.mrb[8].mxu1 %v426_v55 }
 0x10c   : > { %v381_v59 = vpop.f32.mrb[16].mxu0 }
 0x10d   : > { %v383_v60 = vpop.f32.mrb[17].mxu0 }
 0x10e   : > { %v958_v61 = vpack.c.bf16 %v383_v60, %v381_v59  ;;  %v385_v62 = vpop.f32.mrb[18].mxu0 }
 0x10f   : > { %v428_v63 = vpack.c.bf16 %v385_v62, %v381_v59  ;;  %v387_v0 = vpop.f32.mrb[19].mxu0 }
 0x110   : > { %524 = vst [vmem:[%s1348_s12 + $0x40] sm:$0xff] %v958_v61  ;;  %v429_v1 = vpack.c.bf16 %v387_v0, %v383_v60  ;;  %v959_v2 = vpack.c.bf16 %v387_v0, %v385_v62 }
 0x112   : > { %525 = vst [vmem:[%s1348_s12 + $0x48] sm:$0xff] %v959_v2  ;;  %724 = vmatprep.mubr.bf16.mxu1 %v429_v1 }
 0x113   : > { %725 = vmatmul.mubr.bf16.gmra.mrb[12].mxu1 %v428_v63 }
 0x114   : > { %v391_v3 = vpop.f32.mrb[20].mxu0 }
 0x115   : > { %v393_v4 = vpop.f32.mrb[21].mxu0 }
 0x116   : > { %v960_v5 = vpack.c.bf16 %v393_v4, %v391_v3  ;;  %v395_v6 = vpop.f32.mrb[22].mxu0 }
 0x117   : > { %v430_v7 = vpack.c.bf16 %v395_v6, %v391_v3  ;;  %v397_v8 = vpop.f32.mrb[23].mxu0 }
 0x118   : > { %526 = vst [vmem:[%s1348_s12 + $0x50] sm:$0xff] %v960_v5  ;;  %v431_v9 = vpack.c.bf16 %v397_v8, %v393_v4  ;;  %v961_v10 = vpack.c.bf16 %v397_v8, %v395_v6 }
 0x11a   : > { %527 = vst [vmem:[%s1348_s12 + $0x58] sm:$0xff] %v961_v10  ;;  %732 = vmatprep.mubr.bf16.mxu1 %v431_v9 }
 0x11b   : > { %733 = vmatmul.mubr.bf16.gmra.mrb[16].mxu1 %v430_v7 }
 0x11c   : > { %v401_v11 = vpop.f32.mrb[24].mxu0 }
 0x11d   : > { %v403_v12 = vpop.f32.mrb[25].mxu0 }
 0x11e   : > { %v962_v13 = vpack.c.bf16 %v403_v12, %v401_v11  ;;  %v405_v14 = vpop.f32.mrb[26].mxu0 }
 0x11f   : > { %v432_v15 = vpack.c.bf16 %v405_v14, %v401_v11  ;;  %v407_v16 = vpop.f32.mrb[27].mxu0 }
 0x120   : > { %528 = vst [vmem:[%s1348_s12 + $0x60] sm:$0xff] %v962_v13  ;;  %v433_v17 = vpack.c.bf16 %v407_v16, %v403_v12  ;;  %v963_v18 = vpack.c.bf16 %v407_v16, %v405_v14 }
 0x122   : > { %529 = vst [vmem:[%s1348_s12 + $0x68] sm:$0xff] %v963_v18  ;;  %740 = vmatprep.mubr.bf16.mxu1 %v433_v17 }
 0x123   : > { %741 = vmatmul.mubr.bf16.gmra.mrb[20].mxu1 %v432_v15 }
 0x124   : > { %v411_v19 = vpop.f32.mrb[28].mxu0 }
 0x125   : > { %v413_v20 = vpop.f32.mrb[29].mxu0 }
 0x126   : > { %v964_v21 = vpack.c.bf16 %v413_v20, %v411_v19  ;;  %v415_v22 = vpop.f32.mrb[30].mxu0 }
 0x127   : > { %v434_v23 = vpack.c.bf16 %v415_v22, %v411_v19  ;;  %v417_v24 = vpop.f32.mrb[31].mxu0 }
 0x128   : > { %530 = vst [vmem:[%s1348_s12 + $0x70] sm:$0xff] %v964_v21  ;;  %v435_v25 = vpack.c.bf16 %v417_v24, %v413_v20  ;;  %v965_v26 = vpack.c.bf16 %v417_v24, %v415_v22 }
 0x12a   : > { %531 = vst [vmem:[%s1348_s12 + $0x78] sm:$0xff] %v965_v26  ;;  %748 = vmatprep.mubr.bf16.mxu1 %v435_v25 }
 0x12b   : > { %749 = vmatmul.mubr.bf16.gmra.mrb[24].mxu1 %v434_v23 }
 0x12c   : > { %1130 = shalt.err (!%p1127_p3)
}
 0x12d   : > { %s1131_s7 = scalar_lea.hbm %s1371_s27, 2048  ;;  %s1135_s10 = scalar_lea.hbm %s1459_s3, 4096 }
 0x12e   : > { %p1132_p4 = scmp.ne.s32.totalorder %s1371_s27, %s1131_s7  ;;  %p1136_p9 = scmp.lt.u32.totalorder %s1371_s27, %s1459_s3 }
 0x12f   : > { %p1137_p10 = scmp.lt.u32.totalorder %s1135_s10, %s1131_s7  ;;  %p1139_p12 = scmp.lt.u32.totalorder %s1131_s7, %s1371_s27 }
 0x130   : > { %p1133_p7 = pnand %p1132_p4, %p1248_p5 }
 0x131   : > { %p1138_p11 = por %p1137_p10, %p1136_p9 }
 0x132   : > { %p1134_p8 = pneg %p1133_p7 }
 0x133   : > { %p1140_p13 = por %p1139_p12, %p1138_p11 }
 0x135   : > { %p1141_p0 = pnand %p1140_p13, %p1134_p8 }
 0x137   : > { %1144 = shalt.err (!%p1141_p0)
}
 0x138   : > { %s1183_s12 = smov 128   ;;  %s1184_s13 = smov 8   ;;  %vm757_vm1 = vcmask 64512  }
 0x139   : > { %1048 = dma.vmem_to_hbm [thread:$0]  (%p1248_p5), %s1373_s14, 2048, %s1371_s27, %s1377_s28, %s1183_s12, %s1183_s12, %s1184_s13  }
 0x13a   : > { %s893_s22 = sshll.u32 %s1468_s29, 3 }
 0x13b   : > { %s1405_s19 = scalar_lea.vmem %s1460_s4, %s893_s22 }
 0x1c6   : > { %v984_v27 = vpop.f32.mrb[32].mxu0 }
 0x1c7   : > { %v985_v28 = vpop.f32.mrb[33].mxu0 }
 0x1c8   : > { %v986_v29 = vadd.f32 %v985_v28, %v984_v27  ;;  %v987_v30 = vpop.f32.mrb[34].mxu0 }
 0x1c9   : > { %v988_v31 = vpop.f32.mrb[35].mxu0 }
 0x1ca   : > { %758 = vst.msk [vmem:[%s1405_s19] sm:$0xff] %vm757_vm1, %v986_v29  ;;  %v989_v32 = vadd.f32 %v988_v31, %v987_v30 }
 0x1cc   : > { %759 = vst.msk [vmem:[%s1405_s19 + $0x8] sm:$0xff] %vm757_vm1, %v989_v32 }
 0x1ce   : > { %v990_v33 = vpop.f32.mrb[0].mxu1 }
 0x1cf   : > { %v991_v34 = vpop.f32.mrb[1].mxu1 }
 0x1d0   : > { %v992_v35 = vadd.f32 %v991_v34, %v990_v33  ;;  %v993_v36 = vpop.f32.mrb[2].mxu1 }
 0x1d1   : > { %v994_v37 = vpop.f32.mrb[3].mxu1 }
 0x1d2   : > { %760 = vst.msk [vmem:[%s1405_s19 + $0x10] sm:$0xff] %vm757_vm1, %v992_v35  ;;  %v995_v38 = vadd.f32 %v994_v37, %v993_v36 }
 0x1d4   : > { %761 = vst.msk [vmem:[%s1405_s19 + $0x18] sm:$0xff] %vm757_vm1, %v995_v38 }
 0x1d6   : > { %v996_v39 = vpop.f32.mrb[4].mxu1 }
 0x1d7   : > { %v997_v40 = vpop.f32.mrb[5].mxu1 }
 0x1d8   : > { %v998_v41 = vadd.f32 %v997_v40, %v996_v39  ;;  %v999_v42 = vpop.f32.mrb[6].mxu1 }
 0x1d9   : > { %v1000_v43 = vpop.f32.mrb[7].mxu1 }
 0x1da   : > { %762 = vst.msk [vmem:[%s1405_s19 + $0x20] sm:$0xff] %vm757_vm1, %v998_v41  ;;  %v1001_v44 = vadd.f32 %v1000_v43, %v999_v42 }
 0x1dc   : > { %763 = vst.msk [vmem:[%s1405_s19 + $0x28] sm:$0xff] %vm757_vm1, %v1001_v44 }
 0x1de   : > { %v1002_v45 = vpop.f32.mrb[8].mxu1 }
 0x1df   : > { %v1003_v46 = vpop.f32.mrb[9].mxu1 }
 0x1e0   : > { %v1004_v47 = vadd.f32 %v1003_v46, %v1002_v45  ;;  %v1005_v48 = vpop.f32.mrb[10].mxu1 }
 0x1e1   : > { %v1006_v49 = vpop.f32.mrb[11].mxu1 }
 0x1e2   : > { %764 = vst.msk [vmem:[%s1405_s19 + $0x30] sm:$0xff] %vm757_vm1, %v1004_v47  ;;  %v1007_v50 = vadd.f32 %v1006_v49, %v1005_v48 }
 0x1e4   : > { %765 = vst.msk [vmem:[%s1405_s19 + $0x38] sm:$0xff] %vm757_vm1, %v1007_v50 }
 0x1e6   : > { %v1008_v51 = vpop.f32.mrb[12].mxu1 }
 0x1e7   : > { %v1009_v52 = vpop.f32.mrb[13].mxu1 }
 0x1e8   : > { %v1010_v53 = vadd.f32 %v1009_v52, %v1008_v51  ;;  %v1011_v54 = vpop.f32.mrb[14].mxu1 }
 0x1e9   : > { %v1012_v55 = vpop.f32.mrb[15].mxu1 }
 0x1ea   : > { %766 = vst.msk [vmem:[%s1405_s19 + $0x40] sm:$0xff] %vm757_vm1, %v1010_v53  ;;  %v1013_v56 = vadd.f32 %v1012_v55, %v1011_v54 }
 0x1ec   : > { %767 = vst.msk [vmem:[%s1405_s19 + $0x48] sm:$0xff] %vm757_vm1, %v1013_v56 }
 0x1ee   : > { %v1014_v57 = vpop.f32.mrb[16].mxu1 }
 0x1ef   : > { %v1015_v58 = vpop.f32.mrb[17].mxu1 }
 0x1f0   : > { %v1016_v59 = vadd.f32 %v1015_v58, %v1014_v57  ;;  %v1017_v60 = vpop.f32.mrb[18].mxu1 }
 0x1f1   : > { %v1018_v61 = vpop.f32.mrb[19].mxu1 }
 0x1f2   : > { %768 = vst.msk [vmem:[%s1405_s19 + $0x50] sm:$0xff] %vm757_vm1, %v1016_v59  ;;  %v1019_v62 = vadd.f32 %v1018_v61, %v1017_v60 }
 0x1f4   : > { %769 = vst.msk [vmem:[%s1405_s19 + $0x58] sm:$0xff] %vm757_vm1, %v1019_v62 }
 0x1f6   : > { %v1020_v63 = vpop.f32.mrb[20].mxu1 }
 0x1f7   : > { %v1021_v0 = vpop.f32.mrb[21].mxu1 }
 0x1f8   : > { %v1022_v1 = vadd.f32 %v1021_v0, %v1020_v63  ;;  %v1023_v2 = vpop.f32.mrb[22].mxu1 }
 0x1f9   : > { %v1024_v3 = vpop.f32.mrb[23].mxu1 }
 0x1fa   : > { %770 = vst.msk [vmem:[%s1405_s19 + $0x60] sm:$0xff] %vm757_vm1, %v1022_v1  ;;  %v1025_v4 = vadd.f32 %v1024_v3, %v1023_v2 }
 0x1fc   : > { %771 = vst.msk [vmem:[%s1405_s19 + $0x68] sm:$0xff] %vm757_vm1, %v1025_v4 }
 0x1fe   : > { %v1026_v5 = vpop.f32.mrb[24].mxu1 }
 0x1ff   : > { %v1027_v6 = vpop.f32.mrb[25].mxu1 }
 0x200   : > { %v1028_v7 = vadd.f32 %v1027_v6, %v1026_v5  ;;  %v1029_v8 = vpop.f32.mrb[26].mxu1 }
 0x201   : > { %v1030_v9 = vpop.f32.mrb[27].mxu1 }
 0x202   : > { %772 = vst.msk [vmem:[%s1405_s19 + $0x70] sm:$0xff] %vm757_vm1, %v1028_v7  ;;  %v1031_v10 = vadd.f32 %v1030_v9, %v1029_v8 }
 0x204   : > { %773 = vst.msk [vmem:[%s1405_s19 + $0x78] sm:$0xff] %vm757_vm1, %v1031_v10 }
 0x205 PF: > { %p1054_p5 = scmp.ge.s32.totalorder %s1179_s18, 2  ;;  %s813_s25 = sand.u32 1, %s1167_s15  }
 0x206   : > { %s814_s29 = scalar_lea.sflag [#allocation3], %s813_s25 }
 0x207   : > { %p1051_p1 = pnand %p1054_p5, %p1252_p6 }
 0x209   : > { %1162 = dma.done.wait (!%p1051_p1), %s814_s29, 2048  }
 0x20a   : > { %1164 = vsyncadd (!%p1051_p1), %s814_s29, 4294965248  ;;  %p15_p2 = scmp.ge.s32.totalorder %s1235_s21, 4   ;;  %s1463_s15 = smov %s1171_s16 }
 0x20b   : > { %s1464_s16 = smov %s1175_s17  ;;  %s1465_s17 = smov %s1246_s24 }
 0x20c   : > { %s1466_s18 = smov %s1235_s21  ;;  %17 = sbr.rel (!%p15_p2) target bundleno = 3 (0x3), region = 79 }
 0x213   :  { %827 = vsyncpa [#allocation3], 1 }
 0x214   :  { %829 = vsyncpa [#allocation3 + $0x1], 1 }

</bundles_post_ra>
